<compile_context>
chip_gen: v7x
topology: tpu7x:2x2x1
jax: 0.10.0
libtpu: 0.0.40
codegen_flags: <defaults>
</compile_context>

<pallas_src>
import functools

import jax
import jax.numpy as jnp
from jax.experimental import pallas as pl
from jax.experimental.pallas import tpu as pltpu

HIDDEN = 30
LANE = 128      # lane tile (last dim)
SUBLANE = 8     # sublane tile (second-to-last dim)


def _round_up(x, m):
    return (x + m - 1) // m * m


def _cdiv(a, b):
    return -(-a // b)


def _choose_batch_tiling(B):
    """Pick (TB, num_blocks, B_pad) for the batch grid axis."""
    if B <= 256:
        num_blocks = 1
    else:
        tb_target = 512 if B < 4096 else 2048
        # >= 2 blocks so the "parallel" axis can shard across both v7x cores.
        num_blocks = max(2, _cdiv(B, tb_target))
    TB = _round_up(_cdiv(B, num_blocks), SUBLANE)
    B_pad = TB * num_blocks
    return TB, num_blocks, B_pad


def _mlp_kernel(x_ref, w1_ref, w2_ref, o_ref):
    # x: (TB, K_pad)  w1: (K_pad, H_pad)  w2: (H_pad, N_pad)  o: (TB, nb_action)
    h = jnp.dot(x_ref[...], w1_ref[...], preferred_element_type=jnp.float32)
    h = jnp.maximum(h, 0.0)                                     # ReLU (VPU)
    q = jnp.dot(h, w2_ref[...], preferred_element_type=jnp.float32)
    n = o_ref.shape[-1]
    o_ref[...] = q[:, :n].astype(o_ref.dtype)                   # narrow masked store


def init_params(key, input_size, nb_action, hidden=HIDDEN):
    """PyTorch nn.Linear default init: U(-1/sqrt(fan_in), 1/sqrt(fan_in)).
    Weights stored in (in, out) layout so the kernel computes x @ W."""
    k1, k2, k3, k4 = jax.random.split(key, 4)
    bound1 = 1.0 / jnp.sqrt(jnp.float32(input_size))
    bound2 = 1.0 / jnp.sqrt(jnp.float32(hidden))
    w1 = jax.random.uniform(k1, (input_size, hidden), jnp.float32, -bound1, bound1)
    b1 = jax.random.uniform(k2, (hidden,), jnp.float32, -bound1, bound1)
    w2 = jax.random.uniform(k3, (hidden, nb_action), jnp.float32, -bound2, bound2)
    b2 = jax.random.uniform(k4, (nb_action,), jnp.float32, -bound2, bound2)
    return w1, b1, w2, b2


def fold_and_pad_params(w1, b1, w2, b2):
    """Fold biases into zero-padded, vreg-aligned weight tiles (done once)."""
    K, H = w1.shape
    _, N = w2.shape
    K_pad = _round_up(K + 1, SUBLANE)   # +1 ones column carries the biases
    H_pad = _round_up(H + 1, LANE)      # +1 constant-one hidden lane carries b2
    N_pad = _round_up(N, LANE)

    w1p = jnp.zeros((K_pad, H_pad), jnp.float32)
    w1p = w1p.at[:K, :H].set(w1)
    w1p = w1p.at[K, :H].set(jnp.ravel(b1))   # b1 row, driven by the ones column
    w1p = w1p.at[K, H].set(1.0)              # h[:, H] == relu(1) == 1 for real rows

    w2p = jnp.zeros((H_pad, N_pad), jnp.float32)
    w2p = w2p.at[:H, :N].set(w2)
    w2p = w2p.at[H, :N].set(jnp.ravel(b2))   # b2 via the constant-one hidden lane
    return w1p, w2p


@functools.partial(jax.jit, static_argnames=("nb_action",))
def network_forward(state, folded_params, nb_action):
    """state: (B, input_size) -> q_values: (B, nb_action), all float32."""
    w1p, w2p = folded_params
    B, K = state.shape
    K_pad, H_pad = w1p.shape
    N_pad = w2p.shape[1]

    TB, num_blocks, B_pad = _choose_batch_tiling(B)

    # Augmented input [state | 1 | 0 ...]; padded batch rows stay all-zero so
    # they yield exactly-zero outputs (no garbage writeback).
    ones = jnp.ones((B, 1), jnp.float32)
    x_aug = jnp.concatenate([state.astype(jnp.float32), ones], axis=1)
    x_aug = jnp.pad(x_aug, ((0, B_pad - B), (0, K_pad - (K + 1))))

    # Useful-work FLOPs, actual HBM bytes moved.
    flops = 2 * B * (K * HIDDEN + HIDDEN * nb_action)
    bytes_accessed = 4 * (B_pad * K_pad + K_pad * H_pad + H_pad * N_pad
                          + B_pad * nb_action)

    out = pl.pallas_call(
        _mlp_kernel,
        out_shape=jax.ShapeDtypeStruct((B_pad, nb_action), jnp.float32),
        grid=(num_blocks,),
        in_specs=[
            pl.BlockSpec((TB, K_pad), lambda i: (i, 0)),      # batch block of states
            pl.BlockSpec((K_pad, H_pad), lambda i: (0, 0)),   # fc1 W+b (VMEM-resident)
            pl.BlockSpec((H_pad, N_pad), lambda i: (0, 0)),   # fc2 W+b (VMEM-resident)
        ],
        out_specs=pl.BlockSpec((TB, nb_action), lambda i: (i, 0)),  # narrow output
        compiler_params=pltpu.CompilerParams(
            dimension_semantics=("parallel",)),
        cost_estimate=pl.CostEstimate(
            flops=flops, transcendentals=0, bytes_accessed=bytes_accessed),
    )(x_aug, w1p, w2p)

    return out if B == B_pad else out[:B]


if __name__ == "__main__":
    # Shapes consistent with the self-driving-car module: input_size=5, nb_action=3.
    input_size, nb_action = 5, 3

    key = jax.random.PRNGKey(0)
    k_params, k_small, k_med = jax.random.split(key, 3)
    w1, b1, w2, b2 = init_params(k_params, input_size, nb_action)
    folded = fold_and_pad_params(w1, b1, w2, b2)

    def reference(x):
        return jnp.maximum(x @ w1 + b1, 0.0) @ w2 + b2

    # Small batch (single-step act selection): single-block path, B_pad=8.
    state_small = jax.random.normal(k_small, (2, input_size), jnp.float32)
    q_small = network_forward(state_small, folded, nb_action)
    jax.block_until_ready(q_small)
    assert q_small.shape == (2, nb_action)
    assert jnp.allclose(q_small, reference(state_small), atol=1e-4, rtol=1e-4)

    # Medium batch with B not a multiple of the block: exercises the adaptive
    # multi-block grid (num_blocks=2, TB=152, B_pad=304) and the [:B] slice.
    state_med = jax.random.normal(k_med, (300, input_size), jnp.float32)
    q_med = network_forward(state_med, folded, nb_action)
    jax.block_until_ready(q_med)
    assert q_med.shape == (300, nb_action)
    assert jnp.allclose(q_med, reference(state_med), atol=1e-4, rtol=1e-4)

    print("KERNEL_OK")
</pallas_src>

<mosaic_0001>
module attributes {stable_mosaic.version = 11 : i64} {
  func.func @_mlp_kernel(%arg0: i32, %arg1: memref<8x8xf32, #tpu.memory_space<vmem>>, %arg2: memref<8x128xf32, #tpu.memory_space<vmem>>, %arg3: memref<128x128xf32, #tpu.memory_space<vmem>>, %arg4: memref<8x3xf32, #tpu.memory_space<vmem>>) attributes {dimension_semantics = [#tpu.dimension_semantics<parallel>], iteration_bounds = array<i64: 1>, scalar_prefetch = 0 : i64, scratch_operands = 0 : i64, tpu.core_type = #tpu.core_type<tc>, window_params = [{transform_indices = @transform_0, window_bounds = array<i64: 8, 8>}, {pipeline_mode = #tpu.pipeline_mode<synchronous>, transform_indices = @transform_1, window_bounds = array<i64: 8, 128>}, {pipeline_mode = #tpu.pipeline_mode<synchronous>, transform_indices = @transform_2, window_bounds = array<i64: 128, 128>}, {transform_indices = @transform_3, window_bounds = array<i64: 8, 3>}]} {
    %c0 = arith.constant 0 : index
    %c0_0 = arith.constant 0 : index
    %0 = vector.load %arg1[%c0, %c0_0] : memref<8x8xf32, #tpu.memory_space<vmem>>, vector<8x8xf32>
    %c0_1 = arith.constant 0 : index
    %c0_2 = arith.constant 0 : index
    %1 = vector.load %arg2[%c0_1, %c0_2] : memref<8x128xf32, #tpu.memory_space<vmem>>, vector<8x128xf32>
    %cst = arith.constant dense<0.000000e+00> : vector<8x128xf32>
    %2 = tpu.matmul %0, %1, %cst {dimension_numbers = #tpu.dot_dimension_numbers<[1], [0], [0], [1], [0, 0, 1, 1], [], []>} : vector<8x8xf32>, vector<8x128xf32>, vector<8x128xf32> -> vector<8x128xf32>
    %cst_3 = arith.constant 0.000000e+00 : f32
    %3 = vector.broadcast %cst_3 : f32 to vector<8x128xf32>
    %4 = arith.maximumf %2, %3 : vector<8x128xf32>
    %c0_4 = arith.constant 0 : index
    %c0_5 = arith.constant 0 : index
    %5 = vector.load %arg3[%c0_4, %c0_5] : memref<128x128xf32, #tpu.memory_space<vmem>>, vector<128x128xf32>
    %cst_6 = arith.constant dense<0.000000e+00> : vector<8x128xf32>
    %6 = tpu.matmul %4, %5, %cst_6 {dimension_numbers = #tpu.dot_dimension_numbers<[1], [0], [0], [1], [0, 0, 1, 1], [], []>} : vector<8x128xf32>, vector<128x128xf32>, vector<8x128xf32> -> vector<8x128xf32>
    %7 = vector.extract_strided_slice %6 {offsets = [0, 0], sizes = [8, 3], strides = [1, 1]} : vector<8x128xf32> to vector<8x3xf32>
    %c0_7 = arith.constant 0 : index
    %c0_8 = arith.constant 0 : index
    %8 = vector.load %arg4[%c0_7, %c0_8] : memref<8x3xf32, #tpu.memory_space<vmem>>, vector<8x3xf32>
    tpu.vector_store %arg4[%c0_7, %c0_8], %7 {strides = array<i32>} : memref<8x3xf32, #tpu.memory_space<vmem>>, vector<8x3xf32>,
    return
  }
  func.func @transform_0(%arg0: i32) -> (i32, i32) {
    %c0_i32 = arith.constant 0 : i32
    %c0_i32_0 = arith.constant 0 : i32
    return %arg0, %c0_i32 : i32, i32
  }
  func.func @transform_1(%arg0: i32) -> (i32, i32) {
    %c0_i32 = arith.constant 0 : i32
    %c0_i32_0 = arith.constant 0 : i32
    %c0_i32_1 = arith.constant 0 : i32
    return %c0_i32, %c0_i32_0 : i32, i32
  }
  func.func @transform_2(%arg0: i32) -> (i32, i32) {
    %c0_i32 = arith.constant 0 : i32
    %c0_i32_0 = arith.constant 0 : i32
    %c0_i32_1 = arith.constant 0 : i32
    return %c0_i32, %c0_i32_0 : i32, i32
  }
  func.func @transform_3(%arg0: i32) -> (i32, i32) {
    %c0_i32 = arith.constant 0 : i32
    %c0_i32_0 = arith.constant 0 : i32
    return %arg0, %c0_i32 : i32, i32
  }
}

</mosaic_0001>

<bundles_post_ra>
// kernel: network_forward.1
= control target key start
LH: loop header
LB: loop body
LE: loop exit
PB: predicated region body
PF: predicated region fallthrough
CT: control target
= control target key end

     0   :  { %8 = vsyncpa [#allocation3], 0  ;;  %s312_s12 = smov [#allocation2]   ;;  %s359_s0 = inlined_call_operand.vmem [shape: f32[8,8], index: 0, kind: input, shape index: {}]   ;;  %s360_s1 = inlined_call_operand.vmem [shape: f32[8,128], index: 1, kind: input, shape index: {}]   ;;  %s361_s2 = inlined_call_operand.hbm [shape: f32[128,128], index: 2, kind: input, shape index: {}]   ;;  %s362_s3 = inlined_call_operand.vmem [shape: f32[8,3], index: 3, kind: output, shape index: {}]  }
   0x1   :  { %s18_s13 = sshll.u32 %s312_s12, 4  ;;  %s288_s16 = scalar_lea.hbm %s361_s2, 2048  ;;  %s19_s13 = int_to_ptr.vmem [resolvable:$true] %s18_s13 }
   0x2   :  { %p289_p0 = scmp.ne.s32.totalorder %s361_s2, %s288_s16  ;;  %p292_p1 = scmp.lt.u32.totalorder %s288_s16, %s361_s2 }
   0x4   :  { %p294_p2 = pnand %p292_p1, %p289_p0 }
   0x6   :  { %297 = shalt.err (!%p294_p2)
}
   0x7   :  { %s298_s21 = scalar_lea.vmem %s19_s13, 2048  ;;  %p303_p4 = scmp.lt.s32.totalorder %s19_s13, %s19_s13 }
   0x8   :  { %p299_p3 = scmp.ne.s32.totalorder %s19_s13, %s298_s21  ;;  %p304_p5 = scmp.lt.s32.totalorder %s298_s21, %s298_s21 }
   0xa   :  { %p305_p6 = por %p304_p5, %p303_p4 }
   0xc   :  { %p306_p7 = pnand %p305_p6, %p299_p3 }
   0xe   :  { %309 = shalt.err (!%p306_p7)
}
   0xf   :  { %s313_s22 = smov 128   ;;  %s314_s23 = smov 8  }
  0x10   :  { %24 = dma.hbm_to_vmem [thread:$0]  %s361_s2, 2048, %s19_s13, [#allocation3], %s313_s22, %s313_s22, %s314_s23  }
  0x11   :  { %310 = dma.done.wait [#allocation3], 2048  }
  0x12   :  { %311 = vsyncadd [#allocation3], 4294965248  ;;  %v315_v0 = vmov 0.0   ;;  %vm316_vm0 = vmmov 0   ;;  %v317_v1 = vmov 0.0|0.0   ;;  %vm30_vm1 = vcmask 64512  }
  0x13   :  { %218 = vmatprep.subr.mxu0 %v315_v0  ;;  %220 = vmatprep.mubr.msk.f32.mxu0 %vm316_vm0, %v315_v0  ;;  %v29_v2 = vld [vmem:[%s360_s1] sm:$0xff]  ;;  %v106_v5 = vld [vmem:[#allocation2 + $0x8] sm:$0xff]  ;;  %v107_v6 = vld [vmem:[#allocation2 + $0x10] sm:$0xff]  ;;  %vm191_vm2 = vcmask 23552  }
  0x14   :  { %258 = vmatprep.subr.bf16.mxu1 %v317_v1  ;;  %255 = vmatprep.mubr.msk.f32.mxu1 %vm316_vm0, %v315_v0  ;;  %v28_v3 = vld [vmem:[%s359_s0] sm:$0xff]  ;;  %v108_v7 = vld [vmem:[#allocation2 + $0x18] sm:$0xff]  ;;  %v110_v11 = vld [vmem:[#allocation2 + $0x28] sm:$0xff] }
  0x15   :  { %v105_v4 = vld [vmem:[#allocation2] sm:$0xff]  ;;  %219 = vmatpush3.msra.mxu0 %v29_v2  ;;  %v262_v9 = vpack.c.bf16 %v108_v7, %v107_v6  ;;  %v111_v13 = vld [vmem:[#allocation2 + $0x30] sm:$0xff]  ;;  %v112_v14 = vld [vmem:[#allocation2 + $0x38] sm:$0xff] }
  0x16   :  { %221 = vmatmul.mubr.msk.f32.vlgmr.msra.gmra.mrb[0].mxu0 %vm30_vm1, %v28_v3  ;;  %v259_v8 = vpack.c.bf16 %v106_v5, %v105_v4  ;;  %v109_v10 = vld [vmem:[#allocation2 + $0x20] sm:$0xff]  ;;  %v268_v15 = vpack.c.bf16 %v112_v14, %v111_v13  ;;  %v114_v17 = vld [vmem:[#allocation2 + $0x48] sm:$0xff]  ;;  %v115_v19 = vld [vmem:[#allocation2 + $0x50] sm:$0xff] }
  0x17   :  { %v265_v12 = vpack.c.bf16 %v110_v11, %v109_v10  ;;  %v113_v16 = vld [vmem:[#allocation2 + $0x40] sm:$0xff]  ;;  %v116_v20 = vld [vmem:[#allocation2 + $0x58] sm:$0xff]  ;;  %v118_v23 = vld [vmem:[#allocation2 + $0x68] sm:$0xff] }
  0x18   :  { %260 = vmatpush3.bf16.msra.mxu1 %v259_v8  ;;  %v271_v18 = vpack.c.bf16 %v114_v17, %v113_v16  ;;  %v274_v21 = vpack.c.bf16 %v116_v20, %v115_v19  ;;  %v117_v22 = vld [vmem:[#allocation2 + $0x60] sm:$0xff]  ;;  %v119_v25 = vld [vmem:[#allocation2 + $0x70] sm:$0xff]  ;;  %v120_v26 = vld [vmem:[#allocation2 + $0x78] sm:$0xff] }
  0x19   :  { %261 = vmatprep.subr.bf16.mxu1 %v317_v1  ;;  %v277_v24 = vpack.c.bf16 %v118_v23, %v117_v22  ;;  %v280_v27 = vpack.c.bf16 %v120_v26, %v119_v25 }
  0x1c   :  { %263 = vmatpush3.bf16.msra.mxu1 %v262_v9 }
  0x1d   :  { %264 = vmatprep.subr.bf16.mxu1 %v317_v1 }
  0x20   :  { %266 = vmatpush3.bf16.msra.mxu1 %v265_v12 }
  0x21   :  { %267 = vmatprep.subr.bf16.mxu1 %v317_v1 }
  0x24   :  { %269 = vmatpush3.bf16.msra.mxu1 %v268_v15 }
  0x25   :  { %270 = vmatprep.subr.bf16.mxu1 %v317_v1 }
  0x28   :  { %272 = vmatpush3.bf16.msra.mxu1 %v271_v18 }
  0x29   :  { %273 = vmatprep.subr.bf16.mxu1 %v317_v1 }
  0x2c   :  { %275 = vmatpush3.bf16.msra.mxu1 %v274_v21 }
  0x2d   :  { %276 = vmatprep.subr.bf16.mxu1 %v317_v1 }
  0x30   :  { %278 = vmatpush3.bf16.msra.mxu1 %v277_v24 }
  0x31   :  { %279 = vmatprep.subr.bf16.mxu1 %v317_v1 }
  0x34   :  { %281 = vmatpush3.bf16.msra.mxu1 %v280_v27 }
  0xe9   :  { %v100_v28 = vpop.f32.mrb[0].mxu0 }
  0xea   :  { %v104_v29 = vmax.f32 %v100_v28, 0.0  ;;  %v222_v30 = vpop.f32.mrb[1].mxu0 }
  0xec   :  { %256 = vmatmul.mubr.f32.vlgmr.msra.gmra.mrb[0].mxu1 %v104_v29 }
 0x1bf   :  { %v187_v31 = vpop.f32.mrb[0].mxu1 }
 0x1c0   :  { %192 = vst.msk [vmem:[%s362_s3] sm:$0xff] %vm191_vm2, %v187_v31  ;;  %v257_v32 = vpop.f32.mrb[1].mxu1 }
 0x1c1   :  { %197 = vsyncpa [#allocation3], 1 }

</bundles_post_ra>
